<compile_context>
chip_gen: v6e
topology: v6e:2x2x1
jax: 0.10.0
libtpu: 0.0.40
codegen_flags: <defaults>
</compile_context>

<pallas_src>
import functools

import jax
import jax.numpy as jnp
from jax.experimental import pallas as pl
from jax.experimental.pallas import tpu as pltpu


def _discriminator_kernel(x_ref, w1_ref, b1_ref, w2_ref, b2_ref, w3_ref, b3_ref,
                          out_ref):
    # x tile: (TB, D_in) f32 straight from HBM; cast to bf16 here (saves the
    # wrapper-side HBM round trip). Weights bf16; biases / w3 row in f32.
    x = x_ref[...].astype(jnp.bfloat16)

    # Layer 1: bf16 MXU matmul, f32 accumulation; LeakyReLU(0.2) in f32 (mul + max).
    h1 = jnp.dot(x, w1_ref[...], preferred_element_type=jnp.float32) + b1_ref[...]
    h1 = jnp.maximum(h1, 0.2 * h1)

    # Layer 2: cast activation back to bf16 for the MXU, accumulate in f32.
    h2 = jnp.dot(h1.astype(jnp.bfloat16), w2_ref[...],
                 preferred_element_type=jnp.float32) + b2_ref[...]
    h2 = jnp.maximum(h2, 0.2 * h2)

    # Layer 3: width-1 output -> VPU multiply + cross-lane reduce (frees the MXU,
    # avoids a 1/128-utilization matmul). Sigmoid on the f32 result (EUP exp).
    z = jnp.sum(h2 * w3_ref[...], axis=-1, keepdims=True) + b3_ref[...]   # (TB, 1)
    out_ref[...] = jax.nn.sigmoid(z).astype(out_ref.dtype)


def make_discriminator_params(key, window_size, feature_dim, hidden_dim):
    """Deterministic init mimicking PyTorch nn.Linear default U(-1/sqrt(fan_in), .)."""
    d_in = window_size * feature_dim
    h4, h2 = hidden_dim * 4, hidden_dim * 2
    dims = [(d_in, h4), (h4, h2), (h2, 1)]
    params = []
    for i, (fin, fout) in enumerate(dims):
        kw, kb = jax.random.split(jax.random.fold_in(key, i))
        bound = 1.0 / (fin ** 0.5)
        w = jax.random.uniform(kw, (fin, fout), jnp.float32, -bound, bound)
        b = jax.random.uniform(kb, (1, fout), jnp.float32, -bound, bound)
        params.append((w, b))
    return params


def _round_up(a, m):
    return (a + m - 1) // m * m


# VMEM accounting (bytes) used to bound the batch tile and the scoped limit.
_VMEM_TILE_BUDGET = 24 * 1024 * 1024   # activations + double-buffered x / out tiles
_VMEM_LIMIT_BYTES = 32 * 1024 * 1024   # explicit scoped limit; safe on v5e/v6e/v7x


def _pick_batch_tile(B, d_in, h4, h2d, batch_tile):
    """Pick the batch tile (static Python ints only)."""
    # Per-row VMEM bytes: double-buffered f32 x tile, in-kernel bf16 copies,
    # f32 intermediates, double-buffered f32 output column.
    per_row = 2 * d_in * 4 + d_in * 2 + h4 * (4 + 2) + h2d * 4 + 2 * 4
    # Resident weights/biases (pessimistically assume double-buffered).
    fixed = 2 * ((d_in * h4 + h4 * h2d) * 2 + (h4 + 2 * h2d + 1) * 4)
    avail = max(_VMEM_TILE_BUDGET - fixed, per_row * 16)
    tb_vmem = max(16, (avail // per_row) // 16 * 16)

    tb = min(_round_up(batch_tile, 16), tb_vmem)
    # v7x: keep >= 2 grid steps whenever possible so both TensorCores get work.
    tb = min(tb, _round_up(-(-B // 2), 16))
    tb = max(tb, 16)
    if tb >= B:
        # Single block covering the whole (possibly non-multiple-of-8) batch.
        tb = B
    return tb


@functools.partial(jax.jit, static_argnames=("batch_tile",))
def discriminator_forward(x, params, *, batch_tile=4096):
    """x: (B, window_size, feature_dim) -> probabilities (B, 1) float32."""
    B = x.shape[0]
    # Flatten only; keep native f32 so x is read from HBM exactly once (cast in-kernel).
    x_flat = x.reshape(B, -1).astype(jnp.float32)
    d_in = x_flat.shape[1]
    (w1, b1), (w2, b2), (w3, b3) = params
    h4 = w1.shape[1]
    h2d = w2.shape[1]

    w1_bf = w1.astype(jnp.bfloat16)
    w2_bf = w2.astype(jnp.bfloat16)
    b1_f = b1.reshape(1, h4).astype(jnp.float32)
    b2_f = b2.reshape(1, h2d).astype(jnp.float32)
    w3_row = w3.reshape(1, h2d).astype(jnp.float32)     # used on the VPU, keep f32
    b3_f = b3.reshape(1, 1).astype(jnp.float32)

    tb = _pick_batch_tile(B, d_in, h4, h2d, batch_tile)
    grid = (pl.cdiv(B, tb),)   # partial final block: rows independent, writes clipped

    flops = 2 * B * (d_in * h4 + h4 * h2d + h2d)
    transcendentals = 2 * B                              # sigmoid = exp + recip per row
    bytes_accessed = (B * d_in * 4                       # x (native f32)
                      + (d_in * h4 + h4 * h2d) * 2       # w1, w2 (bf16)
                      + (h4 + 2 * h2d + 1) * 4           # biases + w3 row (f32)
                      + B * 4)                           # output (f32)

    full = lambda a: pl.BlockSpec(a.shape, lambda i: (0, 0))   # weights stay resident
    out = pl.pallas_call(
        _discriminator_kernel,
        out_shape=jax.ShapeDtypeStruct((B, 1), jnp.float32),
        grid_spec=pltpu.PrefetchScalarGridSpec(
            num_scalar_prefetch=0,
            grid=grid,
            in_specs=[
                pl.BlockSpec((tb, d_in), lambda i: (i, 0)),    # x: tiled over batch
                full(w1_bf), full(b1_f),
                full(w2_bf), full(b2_f),
                full(w3_row), full(b3_f),
            ],
            out_specs=pl.BlockSpec((tb, 1), lambda i: (i, 0)),
        ),
        compiler_params=pltpu.CompilerParams(
            dimension_semantics=("parallel",),
            vmem_limit_bytes=_VMEM_LIMIT_BYTES,
        ),
        cost_estimate=pl.CostEstimate(flops=flops, transcendentals=transcendentals,
                                      bytes_accessed=bytes_accessed),
    )(x_flat, w1_bf, b1_f, w2_bf, b2_f, w3_row, b3_f)
    return out


def reference_forward_bf16(x, params):
    """Pure-JAX reference mirroring the kernel's bf16-in / f32-accumulate path."""
    B = x.shape[0]
    h = x.reshape(B, -1).astype(jnp.bfloat16)
    (w1, b1), (w2, b2), (w3, b3) = params
    h1 = jnp.dot(h, w1.astype(jnp.bfloat16),
                 preferred_element_type=jnp.float32) + b1
    h1 = jnp.maximum(h1, 0.2 * h1)
    h2 = jnp.dot(h1.astype(jnp.bfloat16), w2.astype(jnp.bfloat16),
                 preferred_element_type=jnp.float32) + b2
    h2 = jnp.maximum(h2, 0.2 * h2)
    z = jnp.sum(h2 * w3.reshape(1, -1), axis=-1, keepdims=True) + b3.reshape(1, 1)
    return jax.nn.sigmoid(z)


def reference_forward_f32(x, params):
    """Full-precision reference of the original module (eval mode)."""
    B = x.shape[0]
    h = x.reshape(B, -1).astype(jnp.float32)
    (w1, b1), (w2, b2), (w3, b3) = params
    h = h @ w1 + b1
    h = jnp.where(h > 0, h, 0.2 * h)
    h = h @ w2 + b2
    h = jnp.where(h > 0, h, 0.2 * h)
    z = h @ w3 + b3
    return jax.nn.sigmoid(z)


if __name__ == "__main__":
    window_size = 8
    feature_dim = 4
    hidden_dim = 32

    key = jax.random.PRNGKey(0)
    k_x, k_p, k_x2, k_x3 = jax.random.split(key, 4)

    params = make_discriminator_params(k_p, window_size, feature_dim, hidden_dim)

    # Main run (B=8: single full-array block).
    x = jax.random.normal(k_x, (8, window_size, feature_dim), jnp.float32)
    y = jax.block_until_ready(discriminator_forward(x, params))
    assert y.shape == (8, 1)
    assert jnp.allclose(y, reference_forward_bf16(x, params), atol=1e-4, rtol=1e-4), \
        "mismatch vs bf16 reference"
    assert jnp.allclose(y, reference_forward_f32(x, params), atol=2e-2, rtol=2e-2), \
        "mismatch vs f32 reference"

    # Ragged batch (B=5: non-multiple-of-8 handled as a single full-array block, no pad copy).
    x2 = jax.random.normal(k_x2, (5, window_size, feature_dim), jnp.float32)
    y2 = jax.block_until_ready(discriminator_forward(x2, params))
    assert y2.shape == (5, 1)
    assert jnp.allclose(y2, reference_forward_bf16(x2, params), atol=1e-4, rtol=1e-4)

    # Multi-step grid with a partial final block (B=40 -> tb=32 -> grid=(2,)).
    x3 = jax.random.normal(k_x3, (40, window_size, feature_dim), jnp.float32)
    y3 = jax.block_until_ready(discriminator_forward(x3, params))
    assert y3.shape == (40, 1)
    assert jnp.allclose(y3, reference_forward_bf16(x3, params), atol=1e-4, rtol=1e-4)

    print("KERNEL_OK")
</pallas_src>

<mosaic_0001>
module attributes {stable_mosaic.version = 11 : i64} {
  func.func @_discriminator_kernel(%arg0: i32, %arg1: memref<8x32xf32, #tpu.memory_space<vmem>>, %arg2: memref<32x128xbf16, #tpu.memory_space<vmem>>, %arg3: memref<1x128xf32, #tpu.memory_space<vmem>>, %arg4: memref<128x64xbf16, #tpu.memory_space<vmem>>, %arg5: memref<1x64xf32, #tpu.memory_space<vmem>>, %arg6: memref<1x64xf32, #tpu.memory_space<vmem>>, %arg7: memref<1x1xf32, #tpu.memory_space<vmem>>, %arg8: memref<8x1xf32, #tpu.memory_space<vmem>>) attributes {dimension_semantics = [#tpu.dimension_semantics<parallel>], iteration_bounds = array<i64: 1>, scalar_prefetch = 0 : i64, scratch_operands = 0 : i64, tpu.core_type = #tpu.core_type<tc>, window_params = [{transform_indices = @transform_0, window_bounds = array<i64: 8, 32>}, {pipeline_mode = #tpu.pipeline_mode<synchronous>, transform_indices = @transform_1, window_bounds = array<i64: 32, 128>}, {pipeline_mode = #tpu.pipeline_mode<synchronous>, transform_indices = @transform_2, window_bounds = array<i64: 1, 128>}, {pipeline_mode = #tpu.pipeline_mode<synchronous>, transform_indices = @transform_3, window_bounds = array<i64: 128, 64>}, {pipeline_mode = #tpu.pipeline_mode<synchronous>, transform_indices = @transform_4, window_bounds = array<i64: 1, 64>}, {pipeline_mode = #tpu.pipeline_mode<synchronous>, transform_indices = @transform_5, window_bounds = array<i64: 1, 64>}, {pipeline_mode = #tpu.pipeline_mode<synchronous>, transform_indices = @transform_6, window_bounds = array<i64: 1, 1>}, {transform_indices = @transform_7, window_bounds = array<i64: 8, 1>}]} {
    %c0 = arith.constant 0 : index
    %c0_0 = arith.constant 0 : index
    %0 = vector.load %arg1[%c0, %c0_0] : memref<8x32xf32, #tpu.memory_space<vmem>>, vector<8x32xf32>
    %1 = arith.truncf %0 : vector<8x32xf32> to vector<8x32xbf16>
    %c0_1 = arith.constant 0 : index
    %c0_2 = arith.constant 0 : index
    %2 = vector.load %arg2[%c0_1, %c0_2] : memref<32x128xbf16, #tpu.memory_space<vmem>>, vector<32x128xbf16>
    %cst = arith.constant dense<0.000000e+00> : vector<8x128xf32>
    %3 = tpu.matmul %1, %2, %cst {dimension_numbers = #tpu.dot_dimension_numbers<[1], [0], [0], [1], [0, 0, 1, 1], [], []>} : vector<8x32xbf16>, vector<32x128xbf16>, vector<8x128xf32> -> vector<8x128xf32>
    %c0_3 = arith.constant 0 : index
    %c0_4 = arith.constant 0 : index
    %4 = vector.load %arg3[%c0_3, %c0_4] : memref<1x128xf32, #tpu.memory_space<vmem>>, vector<1x128xf32>
    %5 = vector.broadcast %4 : vector<1x128xf32> to vector<8x128xf32>
    %6 = arith.addf %3, %5 : vector<8x128xf32>
    %cst_5 = arith.constant 2.000000e-01 : f32
    %7 = vector.broadcast %cst_5 : f32 to vector<8x128xf32>
    %8 = arith.mulf %7, %6 : vector<8x128xf32>
    %9 = arith.maximumf %6, %8 : vector<8x128xf32>
    %10 = arith.truncf %9 : vector<8x128xf32> to vector<8x128xbf16>
    %c0_6 = arith.constant 0 : index
    %c0_7 = arith.constant 0 : index
    %11 = vector.load %arg4[%c0_6, %c0_7] : memref<128x64xbf16, #tpu.memory_space<vmem>>, vector<128x64xbf16>
    %cst_8 = arith.constant dense<0.000000e+00> : vector<8x64xf32>
    %12 = tpu.matmul %10, %11, %cst_8 {dimension_numbers = #tpu.dot_dimension_numbers<[1], [0], [0], [1], [0, 0, 1, 1], [], []>} : vector<8x128xbf16>, vector<128x64xbf16>, vector<8x64xf32> -> vector<8x64xf32>
    %c0_9 = arith.constant 0 : index
    %c0_10 = arith.constant 0 : index
    %13 = vector.load %arg5[%c0_9, %c0_10] : memref<1x64xf32, #tpu.memory_space<vmem>>, vector<1x64xf32>
    %14 = vector.broadcast %13 : vector<1x64xf32> to vector<8x64xf32>
    %15 = arith.addf %12, %14 : vector<8x64xf32>
    %cst_11 = arith.constant 2.000000e-01 : f32
    %16 = vector.broadcast %cst_11 : f32 to vector<8x64xf32>
    %17 = arith.mulf %16, %15 : vector<8x64xf32>
    %18 = arith.maximumf %15, %17 : vector<8x64xf32>
    %c0_12 = arith.constant 0 : index
    %c0_13 = arith.constant 0 : index
    %19 = vector.load %arg6[%c0_12, %c0_13] : memref<1x64xf32, #tpu.memory_space<vmem>>, vector<1x64xf32>
    %20 = vector.broadcast %19 : vector<1x64xf32> to vector<8x64xf32>
    %21 = arith.mulf %18, %20 : vector<8x64xf32>
    %cst_14 = arith.constant dense<0.000000e+00> : vector<8xf32>
    %22 = vector.multi_reduction <add>, %21, %cst_14 [1] : vector<8x64xf32> to vector<8xf32>
    %23 = vector.shape_cast %22 : vector<8xf32> to vector<8x1xf32>
    %c0_15 = arith.constant 0 : index
    %c0_16 = arith.constant 0 : index
    %24 = vector.load %arg7[%c0_15, %c0_16] : memref<1x1xf32, #tpu.memory_space<vmem>>, vector<1x1xf32>
    %25 = vector.broadcast %24 : vector<1x1xf32> to vector<8x1xf32>
    %26 = arith.addf %23, %25 : vector<8x1xf32>
    %27 = arith.negf %26 : vector<8x1xf32>
    %28 = math.exp %27 : vector<8x1xf32>
    %cst_17 = arith.constant 1.000000e+00 : f32
    %29 = vector.broadcast %cst_17 : f32 to vector<8x1xf32>
    %30 = arith.addf %29, %28 : vector<8x1xf32>
    %31 = arith.divf %29, %30 : vector<8x1xf32>
    %c0_18 = arith.constant 0 : index
    %c0_19 = arith.constant 0 : index
    %32 = vector.load %arg8[%c0_18, %c0_19] : memref<8x1xf32, #tpu.memory_space<vmem>>, vector<8x1xf32>
    tpu.vector_store %arg8[%c0_18, %c0_19], %31 {strides = array<i32>} : memref<8x1xf32, #tpu.memory_space<vmem>>, vector<8x1xf32>,
    return
  }
  func.func @transform_0(%arg0: i32) -> (i32, i32) {
    %c0_i32 = arith.constant 0 : i32
    %c0_i32_0 = arith.constant 0 : i32
    return %arg0, %c0_i32 : i32, i32
  }
  func.func @transform_1(%arg0: i32) -> (i32, i32) {
    %c0_i32 = arith.constant 0 : i32
    %c0_i32_0 = arith.constant 0 : i32
    %c0_i32_1 = arith.constant 0 : i32
    return %c0_i32, %c0_i32_0 : i32, i32
  }
  func.func @transform_2(%arg0: i32) -> (i32, i32) {
    %c0_i32 = arith.constant 0 : i32
    %c0_i32_0 = arith.constant 0 : i32
    %c0_i32_1 = arith.constant 0 : i32
    return %c0_i32, %c0_i32_0 : i32, i32
  }
  func.func @transform_3(%arg0: i32) -> (i32, i32) {
    %c0_i32 = arith.constant 0 : i32
    %c0_i32_0 = arith.constant 0 : i32
    %c0_i32_1 = arith.constant 0 : i32
    return %c0_i32, %c0_i32_0 : i32, i32
  }
  func.func @transform_4(%arg0: i32) -> (i32, i32) {
    %c0_i32 = arith.constant 0 : i32
    %c0_i32_0 = arith.constant 0 : i32
    %c0_i32_1 = arith.constant 0 : i32
    return %c0_i32, %c0_i32_0 : i32, i32
  }
  func.func @transform_5(%arg0: i32) -> (i32, i32) {
    %c0_i32 = arith.constant 0 : i32
    %c0_i32_0 = arith.constant 0 : i32
    %c0_i32_1 = arith.constant 0 : i32
    return %c0_i32, %c0_i32_0 : i32, i32
  }
  func.func @transform_6(%arg0: i32) -> (i32, i32) {
    %c0_i32 = arith.constant 0 : i32
    %c0_i32_0 = arith.constant 0 : i32
    %c0_i32_1 = arith.constant 0 : i32
    return %c0_i32, %c0_i32_0 : i32, i32
  }
  func.func @transform_7(%arg0: i32) -> (i32, i32) {
    %c0_i32 = arith.constant 0 : i32
    %c0_i32_0 = arith.constant 0 : i32
    return %arg0, %c0_i32 : i32, i32
  }
}

</mosaic_0001>

<bundles_post_ra>
// kernel: discriminator_forward.1
= control target key start
LH: loop header
LB: loop body
LE: loop exit
PB: predicated region body
PF: predicated region fallthrough
CT: control target
= control target key end

     0   :  { %v318_v0 = vmov 0.0   ;;  %vm319_vm0 = vmmov 0   ;;  %vm54_vm1 = vcmask 261120   ;;  %vm222_vm2 = vcmask 523264   ;;  %s408_s1 = inlined_call_operand.vmem [shape: bf16[32,128], index: 1, kind: input, shape index: {}]   ;;  %s409_s0 = inlined_call_operand.vmem [shape: f32[8,32], index: 0, kind: input, shape index: {}]   ;;  %s410_s3 = inlined_call_operand.vmem [shape: bf16[128,64], index: 3, kind: input, shape index: {}]   ;;  %s411_s2 = inlined_call_operand.vmem [shape: f32[1,128], index: 2, kind: input, shape index: {}]   ;;  %s412_s6 = inlined_call_operand.<no memory space> [shape: f32[1,1], index: 6, kind: input, shape index: {}]   ;;  %s413_s4 = inlined_call_operand.vmem [shape: f32[1,64], index: 4, kind: input, shape index: {}]   ;;  %s414_s5 = inlined_call_operand.vmem [shape: f32[1,64], index: 5, kind: input, shape index: {}]   ;;  %s415_s7 = inlined_call_operand.vmem [shape: f32[8,1], index: 7, kind: output, shape index: {}]  }
   0x1   :  { %274 = vmatprep.subr.bf16.mxu0 %v318_v0  ;;  %v304_v1 = vld [vmem:[%s408_s1 + $0x8] sm:$0xff]   ;;  %278 = vmatprep.mubr.msk.bf16.mxu0 %vm319_vm0, %v318_v0  ;;  %v305_v2 = vld [vmem:[%s408_s1] sm:$0xff]   ;;  %v306_v4 = vld [vmem:[%s410_s3 + $0x38] sm:$0xff]   ;;  %v12_v22 = vstv %s412_s6  ;;  %vm240_vm3 = vcmask 7168  }
   0x2   :  { %282 = vmatprep.subr.bf16.mxu1 %v318_v0  ;;  %298 = vmatprep.mubr.msk.bf16.mxu1 %vm319_vm0, %v318_v0  ;;  %v29_v3 = vld [vmem:[%s409_s0] sm:$0xff]  ;;  %v307_v6 = vld [vmem:[%s410_s3 + $0x30] sm:$0xff]   ;;  %v308_v7 = vld [vmem:[%s410_s3 + $0x28] sm:$0xff]   ;;  %13 = vst [vmem:[#allocation2] sm:$0x1] %v12_v22 }
   0x3   :  { %275 = vmatpush3.bf16.msra.mxu0 %v304_v1  ;;  %v30_v5 = vpack.c.bf16 %v29_v3, %v29_v3  ;;  %283 = vmatpush3.bf16.msra.mxu1 %v306_v4  ;;  %v309_v8 = vld [vmem:[%s410_s3 + $0x20] sm:$0xff]   ;;  %v310_v9 = vld [vmem:[%s410_s3 + $0x18] sm:$0xff]   ;;  %v311_v10 = vld [vmem:[%s410_s3 + $0x10] sm:$0xff]  }
   0x4   :  { %276 = vmatprep.subr.bf16.mxu0 %v318_v0  ;;  %284 = vmatprep.subr.bf16.mxu1 %v318_v0  ;;  %v312_v11 = vld [vmem:[%s410_s3 + $0x8] sm:$0xff]   ;;  %v313_v12 = vld [vmem:[%s410_s3] sm:$0xff]  }
   0x5   :  { %v246_v13 = vld [vmem:[%s411_s2] ss:$0 sm:$0xff] }
   0x6   :  { %v250_v23 = vld [vmem:[%s413_s4] ss:$0 sm:$0xff] }
   0x7   :  { %277 = vmatpush3.bf16.msra.mxu0 %v305_v2  ;;  %285 = vmatpush3.bf16.msra.mxu1 %v307_v6  ;;  %v259_v29 = vld [vmem:[%s414_s5] ss:$0 sm:$0xff] }
   0x8   :  { %286 = vmatprep.subr.bf16.mxu1 %v318_v0 }
   0x9   :  { %v260_v34 = vld [vmem:[#allocation2] ss:$0 sm:$0xff] }
   0xa   :  { %279 = vmatmul.mubr.msk.bf16.vlgmr.msra.gmra.mxu0 %vm54_vm1, %v30_v5 }
   0xb   :  { %287 = vmatpush3.bf16.msra.mxu1 %v308_v7 }
   0xc   :  { %288 = vmatprep.subr.bf16.mxu1 %v318_v0 }
   0xf   :  { %289 = vmatpush3.bf16.msra.mxu1 %v309_v8 }
  0x10   :  { %290 = vmatprep.subr.bf16.mxu1 %v318_v0 }
  0x13   :  { %291 = vmatpush3.bf16.msra.mxu1 %v310_v9 }
  0x14   :  { %292 = vmatprep.subr.bf16.mxu1 %v318_v0 }
  0x17   :  { %293 = vmatpush3.bf16.msra.mxu1 %v311_v10 }
  0x18   :  { %294 = vmatprep.subr.bf16.mxu1 %v318_v0 }
  0x1b   :  { %295 = vmatpush3.bf16.msra.mxu1 %v312_v11 }
  0x1c   :  { %296 = vmatprep.subr.bf16.mxu1 %v318_v0 }
  0x1f   :  { %297 = vmatpush3.bf16.msra.mxu1 %v313_v12 }
  0xca   :  { %v92_v14 = vpop.f32.mrf.mxu0 }
  0xcb   :  { %v93_v15 = vadd.f32 %v246_v13, %v92_v14 }
  0xcc   :  { %v280_v16 = vpop.f32.mrf.mxu0 }
  0xcd   :  { %v98_v17 = vmul.f32 0.2, %v93_v15 }
  0xce   :  { %v95_v18 = vpop.f32.mrf.mxu0 }
  0xcf   :  { %v99_v19 = vmax.f32 %v93_v15, %v98_v17 }
  0xd0   :  { %v281_v20 = vpop.f32.mrf.mxu0 }
  0xd1   :  { %v100_v21 = vpack.c.bf16 %v99_v19, %v99_v19 }
  0xd3   :  { %299 = vmatmul.mubr.bf16.vlgmr.msra.gmra.mxu1 %v100_v21 }
 0x193   :  { %v206_v24 = vpop.f32.mrf.mxu1 }
 0x194   :  { %v207_v25 = vadd.f32 %v250_v23, %v206_v24 }
 0x195   :  { %v300_v26 = vpop.f32.mrf.mxu1 }
 0x196   :  { %v212_v27 = vmul.f32 0.2, %v207_v25 }
 0x197   :  { %v209_v28 = vpop.f32.mrf.mxu1 }
 0x198   :  { %v213_v30 = vmax.f32 %v207_v25, %v212_v27 }
 0x199   :  { %v301_v31 = vpop.f32.mrf.mxu1 }
 0x19a   :  { %v221_v32 = vmul.f32 %v259_v29, %v213_v30 }
 0x19c   :  { %v223_v33 = vsel %vm222_vm2, %v221_v32, 0.0 }
 0x19d   :  { %224 = vadd.xlane.f32.xlu0 %v223_v33 }
 0x226   :  { %v225_v35 = vpop.xlane.xlu0 %224 }
 0x227   :  { %v233_v36 = vadd.f32 %v260_v34, %v225_v35 }
 0x229   :  { %v261_v37 = vmul.f32 -1.442695, %v233_v36 }
 0x22b   :  { %314 = vpow2.f32 %v261_v37 }
 0x238   :  { %v315_v38 = vpop.eup %314 }
 0x239   :  { %v237_v39 = vadd.f32 1.0, %v315_v38 }
 0x23b   :  { %316 = vrcp.f32 %v237_v39 }
 0x248   :  { %v317_v40 = vpop.eup %316 }
 0x249   :  { %241 = vst.msk [vmem:[%s415_s7] sm:$0xff] %vm240_vm3, %v317_v40 }

</bundles_post_ra>
